<compile_context>
chip_gen: v7x
topology: tpu7x:2x2x1
jax: 0.10.0
libtpu: 0.0.40
codegen_flags: <defaults>
</compile_context>

<pallas_src>
import functools

import jax
import jax.numpy as jnp
from jax import lax
from jax.experimental import pallas as pl
from jax.experimental.pallas import tpu as pltpu


def _round_up(n, m):
    return ((n + m - 1) // m) * m


def _mlp_kernel(x_ref, gamma_ref, beta_ref, w0_ref, b0_ref, w1_ref, b1_ref,
                o_ref, *, d_real):
    # x tile: (tm, Dp) float32 (Dp = D padded to a multiple of 128).
    x = x_ref[...]
    d_pad = x.shape[-1]
    inv_d = jnp.float32(1.0 / d_real)

    # --- LayerNorm over the *real* feature width (eps = 1e-5) ---
    # Padded lanes of x are zero, so the sum over padded lanes equals the sum
    # over real lanes; only (x - mean) needs masking before the variance.
    mean = jnp.sum(x, axis=-1, keepdims=True) * inv_d
    if d_real == d_pad:
        centered = x - mean
    else:
        lane = lax.broadcasted_iota(jnp.int32, (1, d_pad), 1)
        mask = (lane < d_real).astype(jnp.float32)
        centered = (x - mean) * mask
    var = jnp.sum(centered * centered, axis=-1, keepdims=True) * inv_d
    xn = centered * lax.rsqrt(var + jnp.float32(1e-5))
    xn = xn * gamma_ref[...] + beta_ref[...]   # padded gamma/beta are 0

    # --- fc0: (tm, Dp) @ (Dp, Hp) + (1, Hp); bf16 MXU inputs, f32 accum ---
    h = jnp.dot(xn.astype(w0_ref.dtype), w0_ref[...],
                preferred_element_type=jnp.float32)
    h = h + b0_ref[...]

    # --- exact GELU (erf form, PyTorch nn.GELU default); erf runs on the EUP ---
    h = 0.5 * h * (1.0 + lax.erf(h * jnp.float32(0.7071067811865476)))

    # Dropout: identity at inference.
    # TODO(synk): training-mode dropout would use pltpu.prng_seed/prng_random_bits.

    # --- fc1: (tm, Hp) @ (Hp, Dp) + (1, Dp); bf16 MXU inputs, f32 accum ---
    y = jnp.dot(h.astype(w1_ref.dtype), w1_ref[...],
                preferred_element_type=jnp.float32)
    y = y + b1_ref[...]

    # --- residual (output_dim == input_dim, as in the module defaults) ---
    o_ref[...] = (y + x).astype(o_ref.dtype)


@functools.partial(jax.jit, static_argnames=("block_rows",))
def mlp_pallas(x, gamma, beta, w0, b0, w1, b1, *, block_rows=256):
    """x: (B, S, D) float32. w0: (D, H), w1: (H, D) (i.e. PyTorch weight.T).

    Returns (B, S, D) float32.
    """
    B, S, D = x.shape
    H = w0.shape[1]
    assert w0.shape[0] == D and w1.shape == (H, D)
    R = B * S

    # Lane-dense feature/hidden dims; row tile a multiple of 16 (bf16-safe,
    # satisfies the (8,128) sublane constraint).
    Dp = _round_up(D, 128)
    Hp = _round_up(H, 128)

    # Cap the row tile so the (tm, Hp) f32 hidden intermediate stays ~<= 4 MiB
    # (keeps vreg spill / internal scratch pressure sane for very wide MLPs).
    tm_cap = max(16, ((4 << 20) // (Hp * 4)) // 16 * 16)
    tm = max(16, min(block_rows, tm_cap, _round_up(R, 16)))
    Rp = _round_up(R, tm)

    f32 = jnp.float32
    bf16 = jnp.bfloat16
    x2 = jnp.pad(x.reshape(R, D).astype(f32), ((0, Rp - R), (0, Dp - D)))
    gamma2 = jnp.pad(gamma.reshape(1, D).astype(f32), ((0, 0), (0, Dp - D)))
    beta2 = jnp.pad(beta.reshape(1, D).astype(f32), ((0, 0), (0, Dp - D)))
    w0p = jnp.pad(w0, ((0, Dp - D), (0, Hp - H))).astype(bf16)
    w1p = jnp.pad(w1, ((0, Hp - H), (0, Dp - D))).astype(bf16)
    b0p = jnp.pad(b0.reshape(1, H).astype(f32), ((0, 0), (0, Hp - H)))
    b1p = jnp.pad(b1.reshape(1, D).astype(f32), ((0, 0), (0, Dp - D)))

    grid = (Rp // tm,)

    # Explicit VMEM budget: double-buffered x/out tiles (f32), weights (bf16,
    # constant index_map so DMA'd once but 2 buffers allocated by the pipeline),
    # small params, plus headroom for the (tm, Hp) f32 intermediate.
    vmem_bytes = (
        2 * 2 * tm * Dp * 4            # x tile + out tile, double-buffered
        + 2 * (Dp * Hp + Hp * Dp) * 2  # W0 + W1 (bf16), double-buffered
        + 2 * 2 * (3 * Dp + Hp) * 4    # gamma, beta, b0, b1
        + 2 * tm * Hp * 4              # hidden intermediate headroom
    )
    vmem_limit = min(vmem_bytes + (8 << 20), 100 * 1024 * 1024)

    cost = pl.CostEstimate(
        flops=2 * Rp * (Dp * Hp + Hp * Dp),
        transcendentals=Rp * Hp,
        bytes_accessed=(2 * Rp * Dp * 4                 # x in, y out
                        + (Dp * Hp + Hp * Dp) * 2       # bf16 weights
                        + (3 * Dp + Hp) * 4))           # small params

    kernel = functools.partial(_mlp_kernel, d_real=D)

    out = pl.pallas_call(
        kernel,
        out_shape=jax.ShapeDtypeStruct((Rp, Dp), x.dtype),
        grid_spec=pltpu.PrefetchScalarGridSpec(
            num_scalar_prefetch=0,
            grid=grid,
            in_specs=[
                pl.BlockSpec((tm, Dp), lambda i: (i, 0)),   # x rows
                pl.BlockSpec((1, Dp), lambda i: (0, 0)),    # gamma
                pl.BlockSpec((1, Dp), lambda i: (0, 0)),    # beta
                pl.BlockSpec((Dp, Hp), lambda i: (0, 0)),   # W0 (in, out) bf16
                pl.BlockSpec((1, Hp), lambda i: (0, 0)),    # b0
                pl.BlockSpec((Hp, Dp), lambda i: (0, 0)),   # W1 (in, out) bf16
                pl.BlockSpec((1, Dp), lambda i: (0, 0)),    # b1
            ],
            out_specs=pl.BlockSpec((tm, Dp), lambda i: (i, 0)),
        ),
        compiler_params=pltpu.CompilerParams(
            dimension_semantics=("parallel",),
            vmem_limit_bytes=vmem_limit),
        cost_estimate=cost,
    )(x2, gamma2, beta2, w0p, b0p, w1p, b1p)

    return out[:R, :D].reshape(B, S, D)


def mlp_reference(x, gamma, beta, w0, b0, w1, b1):
    """Pure-JAX (f32) reference matching PyTorch eval-mode semantics."""
    res = x
    mean = jnp.mean(x, axis=-1, keepdims=True)
    var = jnp.mean((x - mean) ** 2, axis=-1, keepdims=True)
    xn = (x - mean) / jnp.sqrt(var + 1e-5) * gamma + beta
    h = xn @ w0 + b0
    h = 0.5 * h * (1.0 + lax.erf(h / jnp.sqrt(2.0)))
    y = h @ w1 + b1
    return y + res


if __name__ == "__main__":
    # Small ViT-token-like shapes: batch=2, seq=8, input_dim=32, hidden=64.
    # (The wrapper pads features/hidden to 128 lanes and rows to the tile.)
    B, S, D, H = 2, 8, 32, 64

    key = jax.random.PRNGKey(0)
    kx, kg, kb, kw0, kb0, kw1, kb1 = jax.random.split(key, 7)

    x = jax.random.normal(kx, (B, S, D), dtype=jnp.float32)

    # Deterministic synthetic parameters (shapes follow the module __init__).
    gamma = 1.0 + 0.05 * jax.random.normal(kg, (D,), dtype=jnp.float32)
    beta = 0.05 * jax.random.normal(kb, (D,), dtype=jnp.float32)
    # Stored as (in, out) == PyTorch weight.T
    w0 = 0.1 * jax.random.normal(kw0, (D, H), dtype=jnp.float32)
    b0 = 0.1 * jax.random.normal(kb0, (H,), dtype=jnp.float32)
    w1 = 0.1 * jax.random.normal(kw1, (H, D), dtype=jnp.float32)
    b1 = 0.1 * jax.random.normal(kb1, (D,), dtype=jnp.float32)

    out = mlp_pallas(x, gamma, beta, w0, b0, w1, b1)
    out = jax.block_until_ready(out)

    ref = mlp_reference(x, gamma, beta, w0, b0, w1, b1)
    assert out.shape == (B, S, D)
    # bf16 MXU operands with f32 accumulation -> loosen tolerance vs f32 ref.
    max_err = float(jnp.max(jnp.abs(out - ref)))
    assert max_err < 5e-2, max_err

    print("KERNEL_OK")
</pallas_src>

<mosaic_0001>
module attributes {stable_mosaic.version = 11 : i64} {
  func.func @_mlp_kernel(%arg0: i32, %arg1: memref<16x128xf32, #tpu.memory_space<vmem>>, %arg2: memref<1x128xf32, #tpu.memory_space<vmem>>, %arg3: memref<1x128xf32, #tpu.memory_space<vmem>>, %arg4: memref<128x128xbf16, #tpu.memory_space<vmem>>, %arg5: memref<1x128xf32, #tpu.memory_space<vmem>>, %arg6: memref<128x128xbf16, #tpu.memory_space<vmem>>, %arg7: memref<1x128xf32, #tpu.memory_space<vmem>>, %arg8: memref<16x128xf32, #tpu.memory_space<vmem>>) attributes {dimension_semantics = [#tpu.dimension_semantics<parallel>], iteration_bounds = array<i64: 1>, scalar_prefetch = 0 : i64, scratch_operands = 0 : i64, tpu.core_type = #tpu.core_type<tc>, window_params = [{transform_indices = @transform_0, window_bounds = array<i64: 16, 128>}, {pipeline_mode = #tpu.pipeline_mode<synchronous>, transform_indices = @transform_1, window_bounds = array<i64: 1, 128>}, {pipeline_mode = #tpu.pipeline_mode<synchronous>, transform_indices = @transform_2, window_bounds = array<i64: 1, 128>}, {pipeline_mode = #tpu.pipeline_mode<synchronous>, transform_indices = @transform_3, window_bounds = array<i64: 128, 128>}, {pipeline_mode = #tpu.pipeline_mode<synchronous>, transform_indices = @transform_4, window_bounds = array<i64: 1, 128>}, {pipeline_mode = #tpu.pipeline_mode<synchronous>, transform_indices = @transform_5, window_bounds = array<i64: 128, 128>}, {pipeline_mode = #tpu.pipeline_mode<synchronous>, transform_indices = @transform_6, window_bounds = array<i64: 1, 128>}, {transform_indices = @transform_7, window_bounds = array<i64: 16, 128>}]} {
    %c0 = arith.constant 0 : index
    %c0_0 = arith.constant 0 : index
    %0 = vector.load %arg1[%c0, %c0_0] : memref<16x128xf32, #tpu.memory_space<vmem>>, vector<16x128xf32>
    %cst = arith.constant dense<0.000000e+00> : vector<16xf32>
    %1 = vector.multi_reduction <add>, %0, %cst [1] : vector<16x128xf32> to vector<16xf32>
    %2 = vector.shape_cast %1 : vector<16xf32> to vector<16x1xf32>
    %cst_1 = arith.constant 3.125000e-02 : f32
    %3 = vector.broadcast %cst_1 : f32 to vector<16x1xf32>
    %4 = arith.mulf %2, %3 : vector<16x1xf32>
    %5 = tpu.iota {dimensions = array<i32: 1>} : vector<1x128xi32>
    %c32_i32 = arith.constant 32 : i32
    %6 = vector.broadcast %c32_i32 : i32 to vector<1x128xi32>
    %7 = arith.cmpi slt, %5, %6 : vector<1x128xi32>
    %8 = arith.extui %7 : vector<1x128xi1> to vector<1x128xi32>
    %9 = arith.sitofp %8 : vector<1x128xi32> to vector<1x128xf32>
    %10 = vector.broadcast %4 : vector<16x1xf32> to vector<16x128xf32>
    %11 = arith.subf %0, %10 : vector<16x128xf32>
    %12 = vector.broadcast %9 : vector<1x128xf32> to vector<16x128xf32>
    %13 = arith.mulf %11, %12 : vector<16x128xf32>
    %14 = arith.mulf %13, %13 : vector<16x128xf32>
    %cst_2 = arith.constant dense<0.000000e+00> : vector<16xf32>
    %15 = vector.multi_reduction <add>, %14, %cst_2 [1] : vector<16x128xf32> to vector<16xf32>
    %16 = vector.shape_cast %15 : vector<16xf32> to vector<16x1xf32>
    %cst_3 = arith.constant 3.125000e-02 : f32
    %17 = vector.broadcast %cst_3 : f32 to vector<16x1xf32>
    %18 = arith.mulf %16, %17 : vector<16x1xf32>
    %cst_4 = arith.constant 9.99999974E-6 : f32
    %19 = vector.broadcast %cst_4 : f32 to vector<16x1xf32>
    %20 = arith.addf %18, %19 : vector<16x1xf32>
    %21 = math.rsqrt %20 : vector<16x1xf32>
    %22 = vector.broadcast %21 : vector<16x1xf32> to vector<16x128xf32>
    %23 = arith.mulf %13, %22 : vector<16x128xf32>
    %c0_5 = arith.constant 0 : index
    %c0_6 = arith.constant 0 : index
    %24 = vector.load %arg2[%c0_5, %c0_6] : memref<1x128xf32, #tpu.memory_space<vmem>>, vector<1x128xf32>
    %25 = vector.broadcast %24 : vector<1x128xf32> to vector<16x128xf32>
    %26 = arith.mulf %23, %25 : vector<16x128xf32>
    %c0_7 = arith.constant 0 : index
    %c0_8 = arith.constant 0 : index
    %27 = vector.load %arg3[%c0_7, %c0_8] : memref<1x128xf32, #tpu.memory_space<vmem>>, vector<1x128xf32>
    %28 = vector.broadcast %27 : vector<1x128xf32> to vector<16x128xf32>
    %29 = arith.addf %26, %28 : vector<16x128xf32>
    %30 = arith.truncf %29 : vector<16x128xf32> to vector<16x128xbf16>
    %c0_9 = arith.constant 0 : index
    %c0_10 = arith.constant 0 : index
    %31 = vector.load %arg4[%c0_9, %c0_10] : memref<128x128xbf16, #tpu.memory_space<vmem>>, vector<128x128xbf16>
    %cst_11 = arith.constant dense<0.000000e+00> : vector<16x128xf32>
    %32 = tpu.matmul %30, %31, %cst_11 {dimension_numbers = #tpu.dot_dimension_numbers<[1], [0], [0], [1], [0, 0, 1, 1], [], []>} : vector<16x128xbf16>, vector<128x128xbf16>, vector<16x128xf32> -> vector<16x128xf32>
    %c0_12 = arith.constant 0 : index
    %c0_13 = arith.constant 0 : index
    %33 = vector.load %arg5[%c0_12, %c0_13] : memref<1x128xf32, #tpu.memory_space<vmem>>, vector<1x128xf32>
    %34 = vector.broadcast %33 : vector<1x128xf32> to vector<16x128xf32>
    %35 = arith.addf %32, %34 : vector<16x128xf32>
    %cst_14 = arith.constant 5.000000e-01 : f32
    %36 = vector.broadcast %cst_14 : f32 to vector<16x128xf32>
    %37 = arith.mulf %36, %35 : vector<16x128xf32>
    %cst_15 = arith.constant 0.707106769 : f32
    %38 = vector.broadcast %cst_15 : f32 to vector<16x128xf32>
    %39 = arith.mulf %35, %38 : vector<16x128xf32>
    %40 = math.erf %39 : vector<16x128xf32>
    %cst_16 = arith.constant 1.000000e+00 : f32
    %41 = vector.broadcast %cst_16 : f32 to vector<16x128xf32>
    %42 = arith.addf %41, %40 : vector<16x128xf32>
    %43 = arith.mulf %37, %42 : vector<16x128xf32>
    %44 = arith.truncf %43 : vector<16x128xf32> to vector<16x128xbf16>
    %c0_17 = arith.constant 0 : index
    %c0_18 = arith.constant 0 : index
    %45 = vector.load %arg6[%c0_17, %c0_18] : memref<128x128xbf16, #tpu.memory_space<vmem>>, vector<128x128xbf16>
    %cst_19 = arith.constant dense<0.000000e+00> : vector<16x128xf32>
    %46 = tpu.matmul %44, %45, %cst_19 {dimension_numbers = #tpu.dot_dimension_numbers<[1], [0], [0], [1], [0, 0, 1, 1], [], []>} : vector<16x128xbf16>, vector<128x128xbf16>, vector<16x128xf32> -> vector<16x128xf32>
    %c0_20 = arith.constant 0 : index
    %c0_21 = arith.constant 0 : index
    %47 = vector.load %arg7[%c0_20, %c0_21] : memref<1x128xf32, #tpu.memory_space<vmem>>, vector<1x128xf32>
    %48 = vector.broadcast %47 : vector<1x128xf32> to vector<16x128xf32>
    %49 = arith.addf %46, %48 : vector<16x128xf32>
    %50 = arith.addf %49, %0 : vector<16x128xf32>
    %c0_22 = arith.constant 0 : index
    %c0_23 = arith.constant 0 : index
    %51 = vector.load %arg8[%c0_22, %c0_23] : memref<16x128xf32, #tpu.memory_space<vmem>>, vector<16x128xf32>
    tpu.vector_store %arg8[%c0_22, %c0_23], %50 {strides = array<i32>} : memref<16x128xf32, #tpu.memory_space<vmem>>, vector<16x128xf32>,
    return
  }
  func.func @transform_0(%arg0: i32) -> (i32, i32) {
    %c0_i32 = arith.constant 0 : i32
    %c0_i32_0 = arith.constant 0 : i32
    return %arg0, %c0_i32 : i32, i32
  }
  func.func @transform_1(%arg0: i32) -> (i32, i32) {
    %c0_i32 = arith.constant 0 : i32
    %c0_i32_0 = arith.constant 0 : i32
    %c0_i32_1 = arith.constant 0 : i32
    return %c0_i32, %c0_i32_0 : i32, i32
  }
  func.func @transform_2(%arg0: i32) -> (i32, i32) {
    %c0_i32 = arith.constant 0 : i32
    %c0_i32_0 = arith.constant 0 : i32
    %c0_i32_1 = arith.constant 0 : i32
    return %c0_i32, %c0_i32_0 : i32, i32
  }
  func.func @transform_3(%arg0: i32) -> (i32, i32) {
    %c0_i32 = arith.constant 0 : i32
    %c0_i32_0 = arith.constant 0 : i32
    %c0_i32_1 = arith.constant 0 : i32
    return %c0_i32, %c0_i32_0 : i32, i32
  }
  func.func @transform_4(%arg0: i32) -> (i32, i32) {
    %c0_i32 = arith.constant 0 : i32
    %c0_i32_0 = arith.constant 0 : i32
    %c0_i32_1 = arith.constant 0 : i32
    return %c0_i32, %c0_i32_0 : i32, i32
  }
  func.func @transform_5(%arg0: i32) -> (i32, i32) {
    %c0_i32 = arith.constant 0 : i32
    %c0_i32_0 = arith.constant 0 : i32
    %c0_i32_1 = arith.constant 0 : i32
    return %c0_i32, %c0_i32_0 : i32, i32
  }
  func.func @transform_6(%arg0: i32) -> (i32, i32) {
    %c0_i32 = arith.constant 0 : i32
    %c0_i32_0 = arith.constant 0 : i32
    %c0_i32_1 = arith.constant 0 : i32
    return %c0_i32, %c0_i32_0 : i32, i32
  }
  func.func @transform_7(%arg0: i32) -> (i32, i32) {
    %c0_i32 = arith.constant 0 : i32
    %c0_i32_0 = arith.constant 0 : i32
    return %arg0, %c0_i32 : i32, i32
  }
}

</mosaic_0001>

<bundles_post_ra>
// kernel: mlp_pallas.1
= control target key start
LH: loop header
LB: loop body
LE: loop exit
PB: predicated region body
PF: predicated region fallthrough
CT: control target
= control target key end

     0   :  { %v425_v2 = vmov 0.0   ;;  %v35_v4 = vlaneseq  ;;  %vm426_vm1 = vmmov 0   ;;  %s568_s0 = inlined_call_operand.vmem [shape: f32[16,128], index: 0, kind: input, shape index: {}]   ;;  %s569_s3 = inlined_call_operand.vmem [shape: bf16[128,128], index: 3, kind: input, shape index: {}]   ;;  %s570_s5 = inlined_call_operand.vmem [shape: bf16[128,128], index: 5, kind: input, shape index: {}]   ;;  %s571_s1 = inlined_call_operand.vmem [shape: f32[1,128], index: 1, kind: input, shape index: {}]   ;;  %s572_s2 = inlined_call_operand.vmem [shape: f32[1,128], index: 2, kind: input, shape index: {}]   ;;  %s573_s4 = inlined_call_operand.vmem [shape: f32[1,128], index: 4, kind: input, shape index: {}]   ;;  %s574_s6 = inlined_call_operand.vmem [shape: f32[1,128], index: 6, kind: input, shape index: {}]   ;;  %s575_s7 = inlined_call_operand.vmem [shape: f32[16,128], index: 7, kind: output, shape index: {}]  }
   0x1   :  { %v470_v0 = vld [vmem:[%s568_s0] sm:$0xff]  ;;  %v476_v1 = vld [vmem:[%s568_s0 + $0x8] sm:$0xff]  ;;  %359 = vmatprep.subr.bf16.mxu0 %v425_v2  ;;  %379 = vmatprep.subr.bf16.mxu1 %v425_v2  ;;  %v403_v18 = vld [vmem:[%s569_s3 + $0x10] sm:$0xff]  }
   0x2   :  { %29 = vadd.xlane.f32.xlu0 %v470_v0  ;;  %v401_v3 = vld [vmem:[%s569_s3] sm:$0xff]   ;;  %v36_v5 = vand.u32 127, %v35_v4  ;;  %v402_v17 = vld [vmem:[%s569_s3 + $0x8] sm:$0xff]   ;;  %v404_v19 = vld [vmem:[%s569_s3 + $0x18] sm:$0xff]   ;;  %375 = vmatprep.mubr.msk.bf16.mxu0 %vm426_vm1, %v425_v2 }
   0x3   :  { %360 = vmatpush3.bf16.msra.mxu0 %v401_v3  ;;  %v405_v20 = vld [vmem:[%s569_s3 + $0x20] sm:$0xff]   ;;  %395 = vmatprep.mubr.msk.bf16.mxu1 %vm426_vm1, %v425_v2  ;;  %v406_v21 = vld [vmem:[%s569_s3 + $0x28] sm:$0xff]   ;;  %v407_v22 = vld [vmem:[%s569_s3 + $0x30] sm:$0xff]  }
   0x4   :  { %361 = vmatprep.subr.bf16.mxu0 %v425_v2  ;;  %vm37_vm0 = vcmp.lt.s32.totalorder %v36_v5, 32  ;;  %v408_v23 = vld [vmem:[%s569_s3 + $0x38] sm:$0xff]   ;;  %v409_v24 = vld [vmem:[%s570_s5] sm:$0xff]   ;;  %v410_v25 = vld [vmem:[%s570_s5 + $0x8] sm:$0xff]  }
   0x5   :  { %v320_v8 = vsel %vm37_vm0, 1.0, %v425_v2  ;;  %380 = vmatpush3.bf16.msra.mxu1 %v409_v24  ;;  %v321_v34 = vld [vmem:[%s571_s1] ss:$0 sm:$0xff]  ;;  %v411_v43 = vld [vmem:[%s570_s5 + $0x10] sm:$0xff]   ;;  %v412_v44 = vld [vmem:[%s570_s5 + $0x18] sm:$0xff]  }
   0x6   :  { %31 = vadd.xlane.f32.xlu0 %v476_v1  ;;  %381 = vmatprep.subr.bf16.mxu1 %v425_v2  ;;  %v322_v38 = vld [vmem:[%s572_s2] ss:$0 sm:$0xff]  ;;  %v414_v46 = vld [vmem:[%s570_s5 + $0x28] sm:$0xff]   ;;  %v415_v47 = vld [vmem:[%s570_s5 + $0x30] sm:$0xff]  }
   0x7   :  { %362 = vmatpush3.bf16.msra.mxu0 %v402_v17  ;;  %v413_v45 = vld [vmem:[%s570_s5 + $0x20] sm:$0xff]   ;;  %v416_v48 = vld [vmem:[%s570_s5 + $0x38] sm:$0xff]  }
   0x8   :  { %363 = vmatprep.subr.bf16.mxu0 %v425_v2  ;;  %v323_v49 = vld [vmem:[%s573_s4] ss:$0 sm:$0xff] }
   0x9   :  { %382 = vmatpush3.bf16.msra.mxu1 %v410_v25  ;;  %v332_v5 = vld [vmem:[%s574_s6] ss:$0 sm:$0xff] }
   0xa   :  { %383 = vmatprep.subr.bf16.mxu1 %v425_v2 }
   0xb   :  { %364 = vmatpush3.bf16.msra.mxu0 %v403_v18 }
   0xc   :  { %365 = vmatprep.subr.bf16.mxu0 %v425_v2 }
   0xd   :  { %384 = vmatpush3.bf16.msra.mxu1 %v411_v43 }
   0xe   :  { %385 = vmatprep.subr.bf16.mxu1 %v425_v2 }
   0xf   :  { %366 = vmatpush3.bf16.msra.mxu0 %v404_v19 }
  0x10   :  { %367 = vmatprep.subr.bf16.mxu0 %v425_v2 }
  0x11   :  { %386 = vmatpush3.bf16.msra.mxu1 %v412_v44 }
  0x12   :  { %387 = vmatprep.subr.bf16.mxu1 %v425_v2 }
  0x13   :  { %368 = vmatpush3.bf16.msra.mxu0 %v405_v20 }
  0x14   :  { %369 = vmatprep.subr.bf16.mxu0 %v425_v2 }
  0x15   :  { %388 = vmatpush3.bf16.msra.mxu1 %v413_v45 }
  0x16   :  { %389 = vmatprep.subr.bf16.mxu1 %v425_v2 }
  0x17   :  { %370 = vmatpush3.bf16.msra.mxu0 %v406_v21 }
  0x18   :  { %371 = vmatprep.subr.bf16.mxu0 %v425_v2 }
  0x19   :  { %390 = vmatpush3.bf16.msra.mxu1 %v414_v46 }
  0x1a   :  { %391 = vmatprep.subr.bf16.mxu1 %v425_v2 }
  0x1b   :  { %372 = vmatpush3.bf16.msra.mxu0 %v407_v22 }
  0x1c   :  { %373 = vmatprep.subr.bf16.mxu0 %v425_v2 }
  0x1d   :  { %392 = vmatpush3.bf16.msra.mxu1 %v415_v47 }
  0x1e   :  { %393 = vmatprep.subr.bf16.mxu1 %v425_v2 }
  0x1f   :  { %374 = vmatpush3.bf16.msra.mxu0 %v408_v23 }
  0x21   :  { %394 = vmatpush3.bf16.msra.mxu1 %v416_v48 }
  0x8f   :  { %v30_v6 = vpop.xlane.xlu0 %29 }
  0x90   :  { %v33_v7 = vmul.f32 0.03125, %v30_v6 }
  0x92   :  { %v40_v9 = vsub.f32 %v470_v0, %v33_v7 }
  0x93   :  { %v32_v10 = vpop.xlane.xlu0 %31 }
  0x94   :  { %v34_v11 = vmul.f32 0.03125, %v32_v10  ;;  %v42_v12 = vmul.f32 %v320_v8, %v40_v9 }
  0x96   :  { %v41_v13 = vsub.f32 %v476_v1, %v34_v11  ;;  %v44_v14 = vmul.f32 %v42_v12, %v42_v12 }
  0x98   :  { %46 = vadd.xlane.f32.xlu1 %v44_v14  ;;  %v43_v15 = vmul.f32 %v320_v8, %v41_v13 }
  0x9a   :  { %v45_v16 = vmul.f32 %v43_v15, %v43_v15 }
  0x9c   :  { %48 = vadd.xlane.f32.xlu1 %v45_v16 }
 0x125   :  { %v47_v26 = vpop.xlane.xlu1 %46 }
 0x126   :  { %v50_v27 = vmul.f32 0.03125, %v47_v26 }
 0x128   :  { %v52_v28 = vadd.f32 1e-05, %v50_v27 }
 0x129   :  { %v49_v29 = vpop.xlane.xlu1 %48 }
 0x12a   :  { %417 = vrsqrt.f32 %v52_v28  ;;  %v51_v30 = vmul.f32 0.03125, %v49_v29 }
 0x12c   :  { %v53_v31 = vadd.f32 1e-05, %v51_v30 }
 0x12e   :  { %419 = vrsqrt.f32 %v53_v31 }
 0x134   :  { %v418_v32 = vpop.eup %417 }
 0x135   :  { %v56_v33 = vmul.f32 %v418_v32, %v42_v12 }
 0x137   :  { %v65_v37 = vmul.f32 %v321_v34, %v56_v33 }
 0x138   :  { %v420_v35 = vpop.eup %419 }
 0x139   :  { %v57_v36 = vmul.f32 %v420_v35, %v43_v15  ;;  %v74_v40 = vadd.f32 %v322_v38, %v65_v37 }
 0x13b   :  { %v66_v39 = vmul.f32 %v321_v34, %v57_v36 }
 0x13d   :  { %v75_v41 = vadd.f32 %v322_v38, %v66_v39 }
 0x13f   :  { %v76_v42 = vpack.c.bf16 %v75_v41, %v74_v40 }
 0x141   :  { %376 = vmatmul.mubr.bf16.vlgmr.msra.gmra.mrb[0].mxu0 %v76_v42 }
 0x214   :  { %v182_v50 = vpop.f32.mrb[0].mxu0 }
 0x215   :  { %v183_v51 = vadd.f32 %v323_v49, %v182_v50  ;;  %v377_v52 = vpop.f32.mrb[1].mxu0 }
 0x216   :  { %v185_v53 = vpop.f32.mrb[2].mxu0 }
 0x217   :  { %v191_v54 = vmul.f32 0.70710677, %v183_v51  ;;  %v186_v55 = vadd.f32 %v323_v49, %v185_v53  ;;  %v378_v56 = vpop.f32.mrb[3].mxu0  ;;  %v189_v61 = vmul.f32 0.5, %v183_v51 }
 0x219   :  { %421 = verf.f32 %v191_v54  ;;  %v192_v57 = vmul.f32 0.70710677, %v186_v55  ;;  %v190_v62 = vmul.f32 0.5, %v186_v55 }
 0x21b   :  { %423 = verf.f32 %v192_v57 }
 0x223   :  { %v422_v58 = vpop.eup %421 }
 0x224   :  { %v195_v59 = vadd.f32 1.0, %v422_v58 }
 0x225   :  { %v424_v60 = vpop.eup %423 }
 0x226   :  { %v196_v63 = vadd.f32 1.0, %v424_v60  ;;  %v197_v2 = vmul.f32 %v195_v59, %v189_v61 }
 0x228   :  { %v198_v3 = vmul.f32 %v196_v63, %v190_v62 }
 0x22a   :  { %v199_v4 = vpack.c.bf16 %v198_v3, %v197_v2 }
 0x22c   :  { %396 = vmatmul.mubr.bf16.vlgmr.msra.gmra.mrb[0].mxu1 %v199_v4 }
 0x2ff   :  { %v305_v6 = vpop.f32.mrb[0].mxu1 }
 0x300   :  { %v306_v7 = vadd.f32 %v332_v5, %v305_v6  ;;  %v397_v8 = vpop.f32.mrb[1].mxu1 }
 0x301   :  { %v308_v9 = vpop.f32.mrb[2].mxu1 }
 0x302   :  { %v312_v10 = vadd.f32 %v306_v7, %v470_v0  ;;  %v309_v11 = vadd.f32 %v332_v5, %v308_v9  ;;  %v398_v12 = vpop.f32.mrb[3].mxu1 }
 0x304   :  { %314 = vst [vmem:[%s575_s7] sm:$0xff] %v312_v10  ;;  %v313_v13 = vadd.f32 %v309_v11, %v476_v1 }
 0x306   :  { %315 = vst [vmem:[%s575_s7 + $0x8] sm:$0xff] %v313_v13 }

</bundles_post_ra>
